<compile_context>
chip_gen: v6e
topology: v6e:2x2x1
jax: 0.10.0
libtpu: 0.0.40
codegen_flags: <defaults>
</compile_context>

<pallas_src>
import functools
import math

import jax
import jax.numpy as jnp
from jax import lax
from jax.experimental import pallas as pl
from jax.experimental.pallas import tpu as pltpu


# ----------------------------------------------------------------------------
# Config (router-relevant fields of the PyTorch module)
# ----------------------------------------------------------------------------
class Config:
    d_model = 32
    num_experts = 16          # perfect square -> num_sub_keys = 4
    top_k = 2
    d_query = 8
    num_routing_heads = 2


def _round_up(a, b):
    return (a + b - 1) // b * b


# ----------------------------------------------------------------------------
# Pass 1: batch statistics.  Accumulates the augmented Gram matrix
#   G = X_aug @ X_aug^T over token tiles, where X_aug = [x^T ; ones ; 0-pad].
#   G[:D,:D] = sum_t x x^T,  G[:D, D] = sum_t x  (padded fake tokens are zero).
# ----------------------------------------------------------------------------
def _gram_kernel(xaug_ref, gram_ref):
    @pl.when(pl.program_id(0) == 0)
    def _init():
        gram_ref[...] = jnp.zeros_like(gram_ref)

    xa = xaug_ref[...]                                   # (D_aug, tile_t)
    gram_ref[...] += lax.dot_general(                    # NT matmul: xa @ xa^T
        xa, xa, (((1,), (1,)), ((), ())),
        preferred_element_type=jnp.float32)


def _batch_gram(xT_aug, tile_t, n_tiles):
    D_aug, _ = xT_aug.shape
    return pl.pallas_call(
        _gram_kernel,
        out_shape=jax.ShapeDtypeStruct((D_aug, D_aug), jnp.float32),
        grid=(n_tiles,),
        in_specs=[pl.BlockSpec((D_aug, tile_t), lambda i: (0, i))],
        out_specs=pl.BlockSpec((D_aug, D_aug), lambda i: (0, 0)),
        compiler_params=pltpu.CompilerParams(
            dimension_semantics=("arbitrary",)),         # grid axis is a reduction
    )(xT_aug)


# ----------------------------------------------------------------------------
# Pass 2: fused Linear + BatchNorm + sub-key scoring.
#   Everything is pre-folded into M_aug = [M^T | c_eff | 0]  (SN_pad, D_aug),
#   and X_aug carries the ones-row, so the kernel is ONE lane-dense matmul:
#     s^T = M_aug @ X_aug  ->  (SN_pad, tile_t)
# ----------------------------------------------------------------------------
def _score_kernel(m_ref, xaug_ref, s_ref):
    s_ref[...] = jnp.dot(m_ref[...], xaug_ref[...],
                         preferred_element_type=jnp.float32)


def _score_tiles(m_aug, xT_aug, tile_t, n_tiles):
    SN_pad, D_aug = m_aug.shape
    _, T_pad = xT_aug.shape
    return pl.pallas_call(
        _score_kernel,
        out_shape=jax.ShapeDtypeStruct((SN_pad, T_pad), jnp.float32),
        grid=(n_tiles,),
        in_specs=[pl.BlockSpec((SN_pad, D_aug), lambda i: (0, 0)),
                  pl.BlockSpec((D_aug, tile_t), lambda i: (0, i))],
        out_specs=pl.BlockSpec((SN_pad, tile_t), lambda i: (0, i)),
        compiler_params=pltpu.CompilerParams(
            dimension_semantics=("parallel",)),          # v7x: shard tiles over 2 TCs
    )(m_aug, xT_aug)


# ----------------------------------------------------------------------------
# Router scoring: two Pallas passes + tiny O(D^2) analytic BN fold in between.
# Returns per-head sub-key scores, shape (T, Hr, 2, nsk).
# ----------------------------------------------------------------------------
def router_scores(x_flat, params, cfg, eps=1e-5):
    T, D = x_flat.shape
    Hr = cfg.num_routing_heads
    nsk = int(math.isqrt(cfg.num_experts))
    SN = Hr * 2 * nsk

    wq = params["wq"]            # (D, Hr*dq)   pre-stacked, (in, out) layout
    kbd = params["keys_bd"]      # (Hr*dq, SN)  block-diagonal sub-keys
    bn_w = params["bn_w"]        # (Hr*dq,)
    bn_b = params["bn_b"]        # (Hr*dq,)

    # ---- layout plumbing: tokens on the lane dim, zero-padded fake tokens ---
    D_aug = _round_up(D + 1, 8)
    SN_pad = _round_up(SN, 8)
    tile_t = min(512, _round_up(T, 128))
    T_pad = _round_up(T, tile_t)
    n_tiles = T_pad // tile_t

    xT = x_flat.astype(jnp.float32).T                        # (D, T)
    xT_aug = jnp.concatenate(
        [xT,
         jnp.ones((1, T), jnp.float32),                      # ones-row (bias lane)
         jnp.zeros((D_aug - D - 1, T), jnp.float32)], axis=0)
    xT_aug = jnp.pad(xT_aug, ((0, 0), (0, T_pad - T)))       # fake tokens = 0

    # ---- pass 1: accumulated Gram / batch statistics (Pallas) ---------------
    G = _batch_gram(xT_aug, tile_t, n_tiles)                 # (D_aug, D_aug)
    mean_x = G[:D, D] / T                                    # (D,)
    cov_x = G[:D, :D] / T - jnp.outer(mean_x, mean_x)        # biased (training BN)

    # Analytic BN fold (bq cancels under training-mode BN, so it is dropped):
    #   var(q_j) = w_j^T Cov(x) w_j ,  g = bn_w * rsqrt(var + eps)
    #   scores   = (x - mean_x) @ (Wq * g) @ kbd + bn_b @ kbd
    var_q = jnp.sum(wq * (cov_x @ wq), axis=0)               # (Hr*dq,)
    g = bn_w * lax.rsqrt(var_q + eps)
    M = (wq * g[None, :]) @ kbd                              # (D, SN)
    c_eff = bn_b @ kbd - mean_x @ M                          # (SN,)

    m_aug = jnp.zeros((SN_pad, D_aug), jnp.float32)
    m_aug = m_aug.at[:SN, :D].set(M.T)
    m_aug = m_aug.at[:SN, D].set(c_eff)

    # ---- pass 2: one lane-dense matmul per token tile (Pallas) --------------
    sT = _score_tiles(m_aug, xT_aug, tile_t, n_tiles)        # (SN_pad, T_pad)
    return sT[:SN, :T].T.reshape(T, Hr, 2, nsk)


# ----------------------------------------------------------------------------
# Full router forward: Pallas scoring + top-k combination (plain JAX)
# ----------------------------------------------------------------------------
def product_key_router(x_flat, params, cfg):
    T = x_flat.shape[0]
    Hr, K = cfg.num_routing_heads, cfg.top_k
    nsk = int(math.isqrt(cfg.num_experts))
    k_cand = min(2 * K, nsk)          # clamp: 2*top_k may exceed num_sub_keys

    scores = router_scores(x_flat, params, cfg)              # (T, Hr, 2, nsk)
    s1 = scores[:, :, 0, :]
    s2 = scores[:, :, 1, :]

    # TODO(synk): data-dependent top-k / gather has no clean Pallas equivalent;
    # kept in plain JAX (vectorized over heads).
    if k_cand >= nsk:
        # Intermediate top_k's would be full sorts -> enumerate all nsk^2 pairs
        # once and take a single top_k; pair index IS the expert index.
        comb = (s1[..., :, None] + s2[..., None, :]).reshape(T, Hr, nsk * nsk)
        fs, expert_idx = lax.top_k(comb, K)
    else:
        ts1, ti1 = lax.top_k(s1, k_cand)
        ts2, ti2 = lax.top_k(s2, k_cand)
        comb = (ts1[..., :, None] + ts2[..., None, :]).reshape(T, Hr, k_cand * k_cand)
        fs, tci = lax.top_k(comb, K)
        i1 = tci // k_cand
        i2 = tci % k_cand
        fi1 = jnp.take_along_axis(ti1, i1, axis=-1)
        fi2 = jnp.take_along_axis(ti2, i2, axis=-1)
        expert_idx = fi1 * nsk + fi2

    fs = jax.nn.softmax(fs.astype(jnp.float32), axis=-1).astype(x_flat.dtype)
    return fs, expert_idx


# ----------------------------------------------------------------------------
# Parameters: PyTorch-equivalent weights, pre-stacked into DMA-ready layouts
# ----------------------------------------------------------------------------
def init_params(cfg, key):
    keys = jax.random.split(key, 4)
    Hr, dq, D = cfg.num_routing_heads, cfg.d_query, cfg.d_model
    nsk = int(math.isqrt(cfg.num_experts))
    half = dq // 2

    # Per-head nn.Linear weights in torch (out, in) layout + shared sub-keys.
    wq_heads = 0.05 * jax.random.normal(keys[0], (Hr, dq, D), jnp.float32)
    bq_heads = 0.02 * jax.random.normal(keys[1], (Hr, dq), jnp.float32)
    sk1 = 0.2 * jax.random.normal(keys[2], (nsk, half), jnp.float32)
    sk2 = 0.2 * jax.random.normal(keys[3], (nsk, half), jnp.float32)

    # Heads stacked on the output dim, pre-transposed to (in, out).
    wq = jnp.transpose(wq_heads, (2, 0, 1)).reshape(D, Hr * dq)
    bn_w = jnp.ones((Hr * dq,), jnp.float32)   # BatchNorm1d default affine
    bn_b = jnp.zeros((Hr * dq,), jnp.float32)

    # Block-diagonal sub-key matrix: one matmul gives per head [q1@SK1^T | q2@SK2^T].
    # NOTE: only used in the tiny O(D*dq*SN) fold, never in the per-token path,
    # so its zero half costs nothing; for very large nsk, score against the
    # shared (dq/2, nsk) tables directly instead.
    kbd = jnp.zeros((Hr * dq, Hr * 2 * nsk), jnp.float32)
    for h in range(Hr):
        r0, c0 = h * dq, h * 2 * nsk
        kbd = kbd.at[r0:r0 + half, c0:c0 + nsk].set(sk1.T)
        kbd = kbd.at[r0 + half:r0 + dq, c0 + nsk:c0 + 2 * nsk].set(sk2.T)

    return {"wq": wq, "keys_bd": kbd, "bn_w": bn_w, "bn_b": bn_b,
            # raw tensors kept only for the pure-JAX reference check
            "_wq_heads": wq_heads, "_bq_heads": bq_heads,
            "_sk1": sk1, "_sk2": sk2}


# ----------------------------------------------------------------------------
# Pure-JAX reference of the scoring path (includes bq; BN cancels it)
# ----------------------------------------------------------------------------
def _router_scores_ref(x_flat, params, cfg, eps=1e-5):
    Hr, dq = cfg.num_routing_heads, cfg.d_query
    nsk = int(math.isqrt(cfg.num_experts))
    half = dq // 2
    hi = lax.Precision.HIGHEST
    outs = []
    for h in range(Hr):
        q = jnp.dot(x_flat, params["_wq_heads"][h].T, precision=hi) + params["_bq_heads"][h]
        mean = jnp.mean(q, axis=0, keepdims=True)
        var = jnp.mean((q - mean) ** 2, axis=0, keepdims=True)
        q = (q - mean) * lax.rsqrt(var + eps)          # affine: weight=1, bias=0
        s1 = jnp.dot(q[:, :half], params["_sk1"].T, precision=hi)
        s2 = jnp.dot(q[:, half:], params["_sk2"].T, precision=hi)
        outs.append(jnp.stack([s1, s2], axis=1))       # (T, 2, nsk)
    return jnp.stack(outs, axis=1)                     # (T, Hr, 2, nsk)


if __name__ == "__main__":
    cfg = Config()
    key = jax.random.PRNGKey(0)
    pkey, dkey = jax.random.split(key)
    params = init_params(cfg, pkey)

    batch, seq = 2, 8
    T = batch * seq
    x_flat = 0.5 * jax.random.normal(dkey, (T, cfg.d_model), jnp.float32)

    fwd = jax.jit(functools.partial(product_key_router, cfg=cfg))
    scores, indices = fwd(x_flat, params)
    jax.block_until_ready((scores, indices))

    # Shape / sanity checks (match the PyTorch module's outputs).
    assert scores.shape == (T, cfg.num_routing_heads, cfg.top_k)
    assert indices.shape == (T, cfg.num_routing_heads, cfg.top_k)
    assert bool(jnp.all(jnp.isfinite(scores)))
    assert bool(jnp.all(jnp.abs(jnp.sum(scores, axis=-1) - 1.0) < 1e-4))
    assert bool(jnp.all((indices >= 0) & (indices < cfg.num_experts)))

    # Numerical check of the fused Pallas scoring against a pure-JAX reference.
    score_fn = jax.jit(functools.partial(router_scores, cfg=cfg))
    s_kernel = score_fn(x_flat, params)
    jax.block_until_ready(s_kernel)
    s_ref = _router_scores_ref(x_flat, params, cfg)
    assert bool(jnp.max(jnp.abs(s_kernel - s_ref)) < 2e-3), "router scores mismatch"

    print("KERNEL_OK")
</pallas_src>

<mosaic_0001>
module attributes {stable_mosaic.version = 11 : i64} {
  func.func @_gram_kernel(%arg0: i32, %arg1: memref<40x128xf32, #tpu.memory_space<vmem>>, %arg2: memref<40x40xf32, #tpu.memory_space<vmem>>) attributes {dimension_semantics = [#tpu.dimension_semantics<arbitrary>], iteration_bounds = array<i64: 1>, scalar_prefetch = 0 : i64, scratch_operands = 0 : i64, tpu.core_type = #tpu.core_type<tc>, window_params = [{transform_indices = @transform_0, window_bounds = array<i64: 40, 128>}, {pipeline_mode = #tpu.pipeline_mode<synchronous>, transform_indices = @transform_1, window_bounds = array<i64: 40, 40>}]} {
    %c0_i32 = arith.constant 0 : i32
    %0 = arith.cmpi eq, %arg0, %c0_i32 : i32
    %1 = arith.extui %0 : i1 to i32
    %c0_i32_0 = arith.constant 0 : i32
    %2 = arith.cmpi ne, %1, %c0_i32_0 : i32
    scf.if %2 {
      %cst_6 = arith.constant 0.000000e+00 : f32
      %8 = vector.broadcast %cst_6 : f32 to vector<40x40xf32>
      %c0_7 = arith.constant 0 : index
      %c0_8 = arith.constant 0 : index
      %9 = vector.load %arg2[%c0_7, %c0_8] : memref<40x40xf32, #tpu.memory_space<vmem>>, vector<40x40xf32>
      tpu.vector_store %arg2[%c0_7, %c0_8], %8 {strides = array<i32>} : memref<40x40xf32, #tpu.memory_space<vmem>>, vector<40x40xf32>,
    } else {
    }
    %c0 = arith.constant 0 : index
    %c0_1 = arith.constant 0 : index
    %3 = vector.load %arg1[%c0, %c0_1] : memref<40x128xf32, #tpu.memory_space<vmem>>, vector<40x128xf32>
    %c0_2 = arith.constant 0 : index
    %c0_3 = arith.constant 0 : index
    %4 = vector.load %arg2[%c0_2, %c0_3] : memref<40x40xf32, #tpu.memory_space<vmem>>, vector<40x40xf32>
    %cst = arith.constant dense<0.000000e+00> : vector<40x40xf32>
    %5 = tpu.matmul %3, %3, %cst {dimension_numbers = #tpu.dot_dimension_numbers<[1], [1], [0], [0], [0, 0, 1, 0], [], []>} : vector<40x128xf32>, vector<40x128xf32>, vector<40x40xf32> -> vector<40x40xf32>
    %6 = arith.addf %4, %5 : vector<40x40xf32>
    %c0_4 = arith.constant 0 : index
    %c0_5 = arith.constant 0 : index
    %7 = vector.load %arg2[%c0_4, %c0_5] : memref<40x40xf32, #tpu.memory_space<vmem>>, vector<40x40xf32>
    tpu.vector_store %arg2[%c0_4, %c0_5], %6 {strides = array<i32>} : memref<40x40xf32, #tpu.memory_space<vmem>>, vector<40x40xf32>,
    return
  }
  func.func @transform_0(%arg0: i32) -> (i32, i32) {
    %c0_i32 = arith.constant 0 : i32
    %c0_i32_0 = arith.constant 0 : i32
    return %c0_i32, %arg0 : i32, i32
  }
  func.func @transform_1(%arg0: i32) -> (i32, i32) {
    %c0_i32 = arith.constant 0 : i32
    %c0_i32_0 = arith.constant 0 : i32
    %c0_i32_1 = arith.constant 0 : i32
    return %c0_i32, %c0_i32_0 : i32, i32
  }
}

module attributes {stable_mosaic.version = 11 : i64} {
  func.func @_score_kernel(%arg0: i32, %arg1: memref<16x40xf32, #tpu.memory_space<vmem>>, %arg2: memref<40x128xf32, #tpu.memory_space<vmem>>, %arg3: memref<16x128xf32, #tpu.memory_space<vmem>>) attributes {dimension_semantics = [#tpu.dimension_semantics<parallel>], iteration_bounds = array<i64: 1>, scalar_prefetch = 0 : i64, scratch_operands = 0 : i64, tpu.core_type = #tpu.core_type<tc>, window_params = [{pipeline_mode = #tpu.pipeline_mode<synchronous>, transform_indices = @transform_0, window_bounds = array<i64: 16, 40>}, {transform_indices = @transform_1, window_bounds = array<i64: 40, 128>}, {transform_indices = @transform_2, window_bounds = array<i64: 16, 128>}]} {
    %c0 = arith.constant 0 : index
    %c0_0 = arith.constant 0 : index
    %0 = vector.load %arg1[%c0, %c0_0] : memref<16x40xf32, #tpu.memory_space<vmem>>, vector<16x40xf32>
    %c0_1 = arith.constant 0 : index
    %c0_2 = arith.constant 0 : index
    %1 = vector.load %arg2[%c0_1, %c0_2] : memref<40x128xf32, #tpu.memory_space<vmem>>, vector<40x128xf32>
    %cst = arith.constant dense<0.000000e+00> : vector<16x128xf32>
    %2 = tpu.matmul %0, %1, %cst {dimension_numbers = #tpu.dot_dimension_numbers<[1], [0], [0], [1], [0, 0, 1, 1], [], []>} : vector<16x40xf32>, vector<40x128xf32>, vector<16x128xf32> -> vector<16x128xf32>
    %c0_3 = arith.constant 0 : index
    %c0_4 = arith.constant 0 : index
    %3 = vector.load %arg3[%c0_3, %c0_4] : memref<16x128xf32, #tpu.memory_space<vmem>>, vector<16x128xf32>
    tpu.vector_store %arg3[%c0_3, %c0_4], %2 {strides = array<i32>} : memref<16x128xf32, #tpu.memory_space<vmem>>, vector<16x128xf32>,
    return
  }
  func.func @transform_0(%arg0: i32) -> (i32, i32) {
    %c0_i32 = arith.constant 0 : i32
    %c0_i32_0 = arith.constant 0 : i32
    %c0_i32_1 = arith.constant 0 : i32
    return %c0_i32, %c0_i32_0 : i32, i32
  }
  func.func @transform_1(%arg0: i32) -> (i32, i32) {
    %c0_i32 = arith.constant 0 : i32
    %c0_i32_0 = arith.constant 0 : i32
    return %c0_i32, %arg0 : i32, i32
  }
  func.func @transform_2(%arg0: i32) -> (i32, i32) {
    %c0_i32 = arith.constant 0 : i32
    %c0_i32_0 = arith.constant 0 : i32
    return %c0_i32, %arg0 : i32, i32
  }
}

</mosaic_0001>

<bundles_post_ra>
// kernel: product_key_router.3
= control target key start
LH: loop header
LB: loop body
LE: loop exit
PB: predicated region body
PF: predicated region fallthrough
CT: control target
= control target key end

     0   :  { %vm18_vm0 = vcmask 326656   ;;  %s172_s1 = inlined_call_operand.vmem [shape: f32[40,128], index: 1, kind: input, shape index: {}]   ;;  %s173_s0 = inlined_call_operand.vmem [shape: f32[16,40], index: 0, kind: input, shape index: {}]   ;;  %s174_s2 = inlined_call_operand.vmem [shape: f32[16,128], index: 2, kind: output, shape index: {}]  }
   0x1   :  { %v17_v0 = vld [vmem:[%s172_s1 + $0x20] sm:$0xff]  ;;  %v16_v1 = vld [vmem:[%s172_s1 + $0x18] sm:$0xff]  ;;  %v15_v3 = vld [vmem:[%s172_s1 + $0x10] sm:$0xff] }
   0x2   :  { %115 = vmatprep.subr.mxu0 %v17_v0  ;;  %v11_v2 = vld [vmem:[%s173_s0] sm:$0xff]  ;;  %v14_v4 = vld [vmem:[%s172_s1 + $0x8] sm:$0xff] }
   0x3   :  { %116 = vmatpush3.msra.mxu0 %v17_v0  ;;  %125 = vmatprep.mubr.msk.f32.mxu0 %vm18_vm0, %v11_v2  ;;  %v13_v5 = vld [vmem:[%s172_s1] sm:$0xff]  ;;  %v12_v6 = vld [vmem:[%s173_s0 + $0x8] sm:$0xff] }
   0x4   :  { %117 = vmatprep.subr.mxu0 %v16_v1 }
   0x5   :  { %118 = vmatpush3.msra.mxu0 %v16_v1 }
   0x6   :  { %119 = vmatprep.subr.mxu0 %v15_v3 }
   0x7   :  { %120 = vmatpush3.msra.mxu0 %v15_v3 }
   0x8   :  { %121 = vmatprep.subr.mxu0 %v14_v4 }
   0x9   :  { %122 = vmatpush3.msra.mxu0 %v14_v4 }
   0xa   :  { %123 = vmatprep.subr.mxu0 %v13_v5 }
   0xb   :  { %124 = vmatpush3.msra.mxu0 %v13_v5 }
   0xc   :  { %126 = vmatmul.mubr.msk.f32.vlgmr.msra.gmra.mxu0 %vm18_vm0, %v12_v6 }
  0xcc   :  { %v127_v7 = vpop.f32.mrf.mxu0 }
  0xcd   :  { %101 = vst [vmem:[%s174_s2 + $0x8] sm:$0xff] %v127_v7 }
  0xce   :  { %v91_v8 = vpop.f32.mrf.mxu0 }
  0xcf   :  { %100 = vst [vmem:[%s174_s2] sm:$0xff] %v91_v8 }

// kernel: product_key_router.2
= control target key start
LH: loop header
LB: loop body
LE: loop exit
PB: predicated region body
PF: predicated region fallthrough
CT: control target
= control target key end

     0   :  { %vm12_vm0 = vcmask 326656   ;;  %v180_v0 = vmov 0.0   ;;  %vm181_vm1 = vmmov 0   ;;  %s267_s0 = inlined_call_operand.vmem [shape: f32[40,128], index: 0, kind: input, shape index: {}]   ;;  %s268_s1 = inlined_call_operand.vmem [shape: f32[40,40], index: 1, kind: output, shape index: {}]  }
   0x1   :  { %143 = vmatprep.subr.mxu0 %v180_v0  ;;  %v22_v1 = vld [vmem:[%s267_s0 + $0x20] sm:$0xff]  ;;  %168 = vmatprep.subr.mxu1 %v180_v0  ;;  %13 = vst.msk [vmem:[%s268_s1] sm:$0xff] %vm12_vm0, %v180_v0  ;;  %14 = vst.msk [vmem:[%s268_s1 + $0x8] sm:$0xff] %vm12_vm0, %v180_v0  ;;  %v21_v2 = vld [vmem:[%s267_s0 + $0x18] sm:$0xff] }
   0x2   :  { %15 = vst.msk [vmem:[%s268_s1 + $0x10] sm:$0xff] %vm12_vm0, %v180_v0  ;;  %16 = vst.msk [vmem:[%s268_s1 + $0x18] sm:$0xff] %vm12_vm0, %v180_v0  ;;  %144 = vmatpush3.xpose.msra.mxu0 %v22_v1  ;;  %173 = vmatpush3.xpose.msra.mxu1 %v22_v1  ;;  %v20_v3 = vld [vmem:[%s267_s0 + $0x10] sm:$0xff]  ;;  %v19_v4 = vld [vmem:[%s267_s0 + $0x8] sm:$0xff] }
   0x3   :  { %17 = vst.msk [vmem:[%s268_s1 + $0x20] sm:$0xff] %vm12_vm0, %v180_v0  ;;  %145 = vmatprep.subr.mxu0 %v180_v0  ;;  %169 = vmatprep.subr.mxu1 %v180_v0  ;;  %v18_v5 = vld [vmem:[%s267_s0] sm:$0xff] }
   0x4   :  { %153 = vmatprep.mubr.msk.f32.mxu0 %vm181_vm1, %v180_v0  ;;  %162 = vmatprep.mubr.msk.f32.mxu1 %vm181_vm1, %v180_v0 }
   0x6   :  { %146 = vmatpush3.xpose.msra.mxu0 %v21_v2  ;;  %174 = vmatpush3.xpose.msra.mxu1 %v21_v2 }
   0x7   :  { %147 = vmatprep.subr.mxu0 %v180_v0  ;;  %170 = vmatprep.subr.mxu1 %v180_v0 }
   0x8   :  { %v23_v6 = vld [vmem:[%s268_s1] sm:$0xff]  ;;  %v24_v13 = vld [vmem:[%s268_s1 + $0x8] sm:$0xff] }
   0x9   :  { %v26_v7 = vld [vmem:[%s268_s1 + $0x18] sm:$0xff]  ;;  %v25_v21 = vld [vmem:[%s268_s1 + $0x10] sm:$0xff] }
   0xa   :  { %148 = vmatpush3.xpose.msra.mxu0 %v20_v3  ;;  %175 = vmatpush3.xpose.msra.mxu1 %v20_v3  ;;  %v27_v15 = vld [vmem:[%s268_s1 + $0x20] sm:$0xff] }
   0xb   :  { %149 = vmatprep.subr.mxu0 %v180_v0  ;;  %171 = vmatprep.subr.mxu1 %v180_v0 }
   0xe   :  { %150 = vmatpush3.xpose.msra.mxu0 %v19_v4  ;;  %176 = vmatpush3.xpose.msra.mxu1 %v19_v4 }
   0xf   :  { %151 = vmatprep.subr.mxu0 %v180_v0  ;;  %172 = vmatprep.subr.mxu1 %v180_v0 }
  0x12   :  { %152 = vmatpush3.xpose.msra.mxu0 %v18_v5  ;;  %177 = vmatpush3.xpose.msra.mxu1 %v18_v5 }
  0x15   :  { %154 = vmatmul.mubr.f32.vlgmr.msra.gmra.mxu0 %v18_v5  ;;  %163 = vmatmul.mubr.f32.vlgmr.msra.gmra.mxu1 %v21_v2 }
  0x16   :  { %156 = vmatprep.mubr.msk.f32.mxu0 %vm181_vm1, %v180_v0  ;;  %165 = vmatprep.mubr.msk.f32.mxu1 %vm181_vm1, %v180_v0 }
  0x19   :  { %157 = vmatmul.mubr.f32.gmra.mxu0 %v19_v4  ;;  %166 = vmatmul.mubr.f32.gmra.mxu1 %v22_v1 }
  0x1a   :  { %159 = vmatprep.mubr.msk.f32.mxu0 %vm181_vm1, %v180_v0 }
  0x1d   :  { %160 = vmatmul.mubr.f32.gmra.mxu0 %v20_v3 }
  0xd5   :  { %v94_v8 = vpop.f32.mrf.mxu0  ;;  %v109_v9 = vpop.f32.mrf.mxu1 }
  0xd6   :  { %v118_v10 = vadd.f32 %v94_v8, %v23_v6  ;;  %v121_v11 = vadd.f32 %v109_v9, %v26_v7 }
  0xd7   :  { %v155_v12 = vpop.f32.mrf.mxu0  ;;  %v164_v14 = vpop.f32.mrf.mxu1 }
  0xd8   :  { %124 = vst.msk [vmem:[%s268_s1] sm:$0xff] %vm12_vm0, %v118_v10  ;;  %127 = vst.msk [vmem:[%s268_s1 + $0x18] sm:$0xff] %vm12_vm0, %v121_v11 }
  0xd9   :  { %v99_v16 = vpop.f32.mrf.mxu0  ;;  %v114_v17 = vpop.f32.mrf.mxu1 }
  0xda   :  { %v119_v18 = vadd.f32 %v99_v16, %v24_v13  ;;  %v122_v19 = vadd.f32 %v114_v17, %v27_v15 }
  0xdb   :  { %v158_v20 = vpop.f32.mrf.mxu0  ;;  %v167_v22 = vpop.f32.mrf.mxu1 }
  0xdc   :  { %125 = vst.msk [vmem:[%s268_s1 + $0x8] sm:$0xff] %vm12_vm0, %v119_v18  ;;  %128 = vst.msk [vmem:[%s268_s1 + $0x20] sm:$0xff] %vm12_vm0, %v122_v19 }
  0xdd   :  { %v104_v23 = vpop.f32.mrf.mxu0 }
  0xde   :  { %v120_v24 = vadd.f32 %v104_v23, %v25_v21 }
  0xdf   :  { %v161_v25 = vpop.f32.mrf.mxu0 }
  0xe0   :  { %126 = vst.msk [vmem:[%s268_s1 + $0x10] sm:$0xff] %vm12_vm0, %v120_v24 }

</bundles_post_ra>
